<compile_context>
chip_gen: v5e
topology: v5e:2x2
jax: 0.10.0
libtpu: 0.0.40
codegen_flags: <defaults>
</compile_context>

<pallas_src>
import jax
import jax.numpy as jnp
from jax import lax
from jax.experimental import pallas as pl
from jax.experimental.pallas import tpu as pltpu


def _round_up(x, m):
    return ((x + m - 1) // m) * m


def _cdiv(a, b):
    return (a + b - 1) // b


def _mlp_kernel(x_ref, w1_ref, b1_ref, w2_ref, b2_ref, w3t_ref, b3_ref, o_ref):
    # x_ref:  (block_b, D) in the caller's dtype (cast on-chip below)
    # w1_ref: (64, D)   w2_ref: (32, 64)   w3t_ref: (32, 1)   biases: (out, 1)
    # o_ref:  (1, block_b)  — batch on the 128-lane axis, lane-dense store.
    x = x_ref[...].astype(w1_ref.dtype)

    # fc1 + ReLU: contract dim 1 of both operands -> (64, block_b), f32 acc.
    h1 = lax.dot_general(
        w1_ref[...], x, (((1,), (1,)), ((), ())),
        preferred_element_type=jnp.float32)
    h1 = jnp.maximum(h1 + b1_ref[...], 0.0)

    # fc2 + ReLU: (32, 64) @ (64, block_b) -> (32, block_b), f32 acc.
    h2 = jnp.dot(w2_ref[...], h1.astype(w2_ref.dtype),
                 preferred_element_type=jnp.float32)
    h2 = jnp.maximum(h2 + b2_ref[...], 0.0)

    # fc3: M=1 matmul replaced by VPU multiply + sublane reduction (off-MXU).
    y = jnp.sum(w3t_ref[...] * h2, axis=0, keepdims=True)
    o_ref[...] = (y + b3_ref[...]).astype(o_ref.dtype)


def house_price_model(x, params, *, max_block_b=16384, compute_dtype=jnp.float32):
    """Forward pass of HousePriceModel as a single Pallas TPU kernel.

    x:      (B, input_dim) array (read directly, no wrapper transpose/cast pass)
    params: PyTorch-layout weights: w1 (64, D), w2 (32, 64), w3 (1, 32);
            biases b1/b2/b3 as (out, 1) or (out,).
    max_block_b:   cap on the batch tile (lane axis); actual tile is adaptive.
    compute_dtype: dtype of the MXU inputs (x cast in-kernel); accumulation,
                   bias and ReLU math stay float32.
    """
    w1, b1 = params["w1"], params["b1"]
    w2, b2 = params["w2"], params["b2"]
    w3, b3 = params["w3"], params["b3"]

    B, D = x.shape
    x_itemsize = jnp.dtype(x.dtype).itemsize
    c_itemsize = jnp.dtype(compute_dtype).itemsize

    # ---- batch-tile selection (batch lives on the 128-lane axis) -----------
    b128 = _round_up(B, 128)
    lanes_d = _round_up(D, 128)          # VMEM lane-pads the (block_b, D) tile
    sub_d = _round_up(D, 8)
    # per-column footprint: dbl-buffered x tile + in-kernel cast/transpose copy
    # + f32 h1/h2 + dbl-buffered output row.
    per_col = (2 * lanes_d * x_itemsize + sub_d * c_itemsize
               + (64 + 32) * 4 + 2 * 8 * 4)
    vmem_budget = 40 << 20               # conservative for v7x's 64 MiB VMEM
    budget_cols = max(128, (vmem_budget // per_col) // 128 * 128)
    cap = max(128, min(_round_up(int(max_block_b), 128), budget_cols))

    n_steps = _cdiv(b128, cap)
    if n_steps == 1 and b128 >= 256:
        n_steps = 2                      # keep >=2 tiles: engage v7x's 2nd TC
    block_b = _round_up(_cdiv(b128, n_steps), 128)
    grid_steps = _cdiv(b128, block_b)
    b_pad = grid_steps * block_b

    # Tiny-batch defensive pad (negligible copy).  Large batches are fed as-is;
    # the ragged last tile is handled by Pallas' partial-block DMA and the
    # garbage tail columns are sliced off below.
    x_in = jnp.pad(x, ((0, block_b - B), (0, 0))) if B < block_b else x

    # ---- tiny one-time weight/bias layout prep (no pass over x) ------------
    w1c = w1.astype(compute_dtype)
    w2c = w2.astype(compute_dtype)
    b1f = b1.reshape(-1, 1).astype(jnp.float32)
    b2f = b2.reshape(-1, 1).astype(jnp.float32)
    b3f = b3.reshape(-1, 1).astype(jnp.float32)
    w3t = w3.reshape(1, -1).T.astype(jnp.float32)        # (32, 1)

    def full(arr):
        nd = arr.ndim
        return pl.BlockSpec(arr.shape, lambda i, _nd=nd: (0,) * _nd)

    # Per-step VMEM footprint -> scoped limit with headroom (<= 56 MiB so it
    # stays legal on v7x; v5e/v6e have 128 MiB so this never hurts them).
    est = (2 * block_b * lanes_d * x_itemsize
           + block_b * sub_d * c_itemsize
           + block_b * (64 + 32) * 4
           + 2 * block_b * 8 * 4
           + (1 << 20))
    vmem_limit = int(min(56 << 20, max(32 << 20, est + (8 << 20))))

    weight_bytes = sum(int(a.size) * int(a.dtype.itemsize)
                       for a in (w1c, b1f, w2c, b2f, w3t, b3f))
    cost = pl.CostEstimate(
        flops=2 * B * (D * 64 + 64 * 32 + 32 * 1),
        transcendentals=0,
        bytes_accessed=int(B * D * x_itemsize + b_pad * 4 + weight_bytes),
    )

    out = pl.pallas_call(
        _mlp_kernel,
        out_shape=jax.ShapeDtypeStruct((1, b_pad), jnp.float32),
        grid_spec=pltpu.PrefetchScalarGridSpec(
            num_scalar_prefetch=0,
            grid=(grid_steps,),
            in_specs=[
                pl.BlockSpec((block_b, D), lambda i: (i, 0)),   # contiguous HBM tile
                full(w1c), full(b1f),
                full(w2c), full(b2f),
                full(w3t), full(b3f),
            ],
            out_specs=pl.BlockSpec((1, block_b), lambda i: (0, i)),  # lane-dense
        ),
        compiler_params=pltpu.CompilerParams(
            dimension_semantics=("parallel",),   # shards batch tiles across TCs
            vmem_limit_bytes=vmem_limit,
        ),
        cost_estimate=cost,
    )(x_in, w1c, b1f, w2c, b2f, w3t, b3f)

    # (1, b_pad) -> (B, 1); the slice drops padded tail columns.
    return out[0, :B].reshape(B, 1)


def init_params(input_dim, key):
    """Deterministic synthetic params with torch.nn.Linear (out, in) weight
    layout, plus (out, 1) biases for the batch-on-lanes kernel."""
    k1, k2, k3, k4, k5, k6 = jax.random.split(key, 6)

    def unif(k, shape, fan_in):
        bound = 1.0 / jnp.sqrt(fan_in)
        return jax.random.uniform(k, shape, jnp.float32, -bound, bound)

    return {
        "w1": unif(k1, (64, input_dim), input_dim),
        "b1": unif(k2, (64, 1), input_dim),
        "w2": unif(k3, (32, 64), 64),
        "b2": unif(k4, (32, 1), 64),
        "w3": unif(k5, (1, 32), 32),
        "b3": unif(k6, (1, 1), 32),
    }


def reference_forward(x, params):
    h = jnp.maximum(x @ params["w1"].T + params["b1"].T, 0.0)
    h = jnp.maximum(h @ params["w2"].T + params["b2"].T, 0.0)
    return h @ params["w3"].T + params["b3"].T


if __name__ == "__main__":
    key = jax.random.PRNGKey(0)
    kx, kp, kx2 = jax.random.split(key, 3)

    batch, input_dim = 8, 16
    x = jax.random.normal(kx, (batch, input_dim), jnp.float32)
    params = init_params(input_dim, kp)
    y_ref = reference_forward(x, params)

    # 1) f32 path, tiny batch -> single resident tile, tight tolerance.
    y = jax.block_until_ready(house_price_model(x, params))
    assert y.shape == (batch, 1)
    assert jnp.allclose(y, y_ref, atol=1e-5, rtol=1e-5)

    # 2) bf16 MXU inputs (x cast in-kernel) with f32 accumulation/bias/ReLU.
    y_bf16 = jax.block_until_ready(
        house_price_model(x, params, compute_dtype=jnp.bfloat16))
    assert y_bf16.shape == (batch, 1)
    assert jnp.allclose(y_bf16, y_ref, atol=5e-2, rtol=5e-2)

    # 3) Ragged batch + multi-step grid (partial last tile, adaptive tiling).
    batch2 = 300
    x2 = jax.random.normal(kx2, (batch2, input_dim), jnp.float32)
    y2 = jax.block_until_ready(house_price_model(x2, params, max_block_b=128))
    y2_ref = reference_forward(x2, params)
    assert y2.shape == (batch2, 1)
    assert jnp.allclose(y2, y2_ref, atol=1e-5, rtol=1e-5)

    print("KERNEL_OK")
</pallas_src>

<mosaic_0001>
module attributes {stable_mosaic.version = 11 : i64} {
  func.func @_mlp_kernel(%arg0: i32, %arg1: memref<128x16xf32, #tpu.memory_space<vmem>>, %arg2: memref<64x16xf32, #tpu.memory_space<vmem>>, %arg3: memref<64x1xf32, #tpu.memory_space<vmem>>, %arg4: memref<32x64xf32, #tpu.memory_space<vmem>>, %arg5: memref<32x1xf32, #tpu.memory_space<vmem>>, %arg6: memref<32x1xf32, #tpu.memory_space<vmem>>, %arg7: memref<1x1xf32, #tpu.memory_space<vmem>>, %arg8: memref<1x128xf32, #tpu.memory_space<vmem>>) attributes {dimension_semantics = [#tpu.dimension_semantics<parallel>], iteration_bounds = array<i64: 1>, scalar_prefetch = 0 : i64, scratch_operands = 0 : i64, tpu.core_type = #tpu.core_type<tc>, window_params = [{transform_indices = @transform_0, window_bounds = array<i64: 128, 16>}, {pipeline_mode = #tpu.pipeline_mode<synchronous>, transform_indices = @transform_1, window_bounds = array<i64: 64, 16>}, {pipeline_mode = #tpu.pipeline_mode<synchronous>, transform_indices = @transform_2, window_bounds = array<i64: 64, 1>}, {pipeline_mode = #tpu.pipeline_mode<synchronous>, transform_indices = @transform_3, window_bounds = array<i64: 32, 64>}, {pipeline_mode = #tpu.pipeline_mode<synchronous>, transform_indices = @transform_4, window_bounds = array<i64: 32, 1>}, {pipeline_mode = #tpu.pipeline_mode<synchronous>, transform_indices = @transform_5, window_bounds = array<i64: 32, 1>}, {pipeline_mode = #tpu.pipeline_mode<synchronous>, transform_indices = @transform_6, window_bounds = array<i64: 1, 1>}, {transform_indices = @transform_7, window_bounds = array<i64: 1, 128>}]} {
    %c0 = arith.constant 0 : index
    %c0_0 = arith.constant 0 : index
    %0 = vector.load %arg1[%c0, %c0_0] : memref<128x16xf32, #tpu.memory_space<vmem>>, vector<128x16xf32>
    %c0_1 = arith.constant 0 : index
    %c0_2 = arith.constant 0 : index
    %1 = vector.load %arg2[%c0_1, %c0_2] : memref<64x16xf32, #tpu.memory_space<vmem>>, vector<64x16xf32>
    %cst = arith.constant dense<0.000000e+00> : vector<64x128xf32>
    %2 = tpu.matmul %1, %0, %cst {dimension_numbers = #tpu.dot_dimension_numbers<[1], [1], [0], [0], [0, 0, 1, 0], [], []>} : vector<64x16xf32>, vector<128x16xf32>, vector<64x128xf32> -> vector<64x128xf32>
    %c0_3 = arith.constant 0 : index
    %c0_4 = arith.constant 0 : index
    %3 = vector.load %arg3[%c0_3, %c0_4] : memref<64x1xf32, #tpu.memory_space<vmem>>, vector<64x1xf32>
    %4 = vector.broadcast %3 : vector<64x1xf32> to vector<64x128xf32>
    %5 = arith.addf %2, %4 : vector<64x128xf32>
    %cst_5 = arith.constant 0.000000e+00 : f32
    %6 = vector.broadcast %cst_5 : f32 to vector<64x128xf32>
    %7 = arith.maximumf %5, %6 : vector<64x128xf32>
    %c0_6 = arith.constant 0 : index
    %c0_7 = arith.constant 0 : index
    %8 = vector.load %arg4[%c0_6, %c0_7] : memref<32x64xf32, #tpu.memory_space<vmem>>, vector<32x64xf32>
    %cst_8 = arith.constant dense<0.000000e+00> : vector<32x128xf32>
    %9 = tpu.matmul %8, %7, %cst_8 {dimension_numbers = #tpu.dot_dimension_numbers<[1], [0], [0], [1], [0, 0, 1, 1], [], []>} : vector<32x64xf32>, vector<64x128xf32>, vector<32x128xf32> -> vector<32x128xf32>
    %c0_9 = arith.constant 0 : index
    %c0_10 = arith.constant 0 : index
    %10 = vector.load %arg5[%c0_9, %c0_10] : memref<32x1xf32, #tpu.memory_space<vmem>>, vector<32x1xf32>
    %11 = vector.broadcast %10 : vector<32x1xf32> to vector<32x128xf32>
    %12 = arith.addf %9, %11 : vector<32x128xf32>
    %cst_11 = arith.constant 0.000000e+00 : f32
    %13 = vector.broadcast %cst_11 : f32 to vector<32x128xf32>
    %14 = arith.maximumf %12, %13 : vector<32x128xf32>
    %c0_12 = arith.constant 0 : index
    %c0_13 = arith.constant 0 : index
    %15 = vector.load %arg6[%c0_12, %c0_13] : memref<32x1xf32, #tpu.memory_space<vmem>>, vector<32x1xf32>
    %16 = vector.broadcast %15 : vector<32x1xf32> to vector<32x128xf32>
    %17 = arith.mulf %16, %14 : vector<32x128xf32>
    %cst_14 = arith.constant dense<0.000000e+00> : vector<128xf32>
    %18 = vector.multi_reduction <add>, %17, %cst_14 [0] : vector<32x128xf32> to vector<128xf32>
    %19 = vector.shape_cast %18 : vector<128xf32> to vector<1x128xf32>
    %c0_15 = arith.constant 0 : index
    %c0_16 = arith.constant 0 : index
    %20 = vector.load %arg7[%c0_15, %c0_16] : memref<1x1xf32, #tpu.memory_space<vmem>>, vector<1x1xf32>
    %21 = vector.broadcast %20 : vector<1x1xf32> to vector<1x128xf32>
    %22 = arith.addf %19, %21 : vector<1x128xf32>
    %c0_17 = arith.constant 0 : index
    %c0_18 = arith.constant 0 : index
    %23 = vector.load %arg8[%c0_17, %c0_18] : memref<1x128xf32, #tpu.memory_space<vmem>>, vector<1x128xf32>
    tpu.vector_store %arg8[%c0_17, %c0_18], %22 {strides = array<i32>} : memref<1x128xf32, #tpu.memory_space<vmem>>, vector<1x128xf32>,
    return
  }
  func.func @transform_0(%arg0: i32) -> (i32, i32) {
    %c0_i32 = arith.constant 0 : i32
    %c0_i32_0 = arith.constant 0 : i32
    return %arg0, %c0_i32 : i32, i32
  }
  func.func @transform_1(%arg0: i32) -> (i32, i32) {
    %c0_i32 = arith.constant 0 : i32
    %c0_i32_0 = arith.constant 0 : i32
    %c0_i32_1 = arith.constant 0 : i32
    return %c0_i32, %c0_i32_0 : i32, i32
  }
  func.func @transform_2(%arg0: i32) -> (i32, i32) {
    %c0_i32 = arith.constant 0 : i32
    %c0_i32_0 = arith.constant 0 : i32
    %c0_i32_1 = arith.constant 0 : i32
    return %c0_i32, %c0_i32_0 : i32, i32
  }
  func.func @transform_3(%arg0: i32) -> (i32, i32) {
    %c0_i32 = arith.constant 0 : i32
    %c0_i32_0 = arith.constant 0 : i32
    %c0_i32_1 = arith.constant 0 : i32
    return %c0_i32, %c0_i32_0 : i32, i32
  }
  func.func @transform_4(%arg0: i32) -> (i32, i32) {
    %c0_i32 = arith.constant 0 : i32
    %c0_i32_0 = arith.constant 0 : i32
    %c0_i32_1 = arith.constant 0 : i32
    return %c0_i32, %c0_i32_0 : i32, i32
  }
  func.func @transform_5(%arg0: i32) -> (i32, i32) {
    %c0_i32 = arith.constant 0 : i32
    %c0_i32_0 = arith.constant 0 : i32
    %c0_i32_1 = arith.constant 0 : i32
    return %c0_i32, %c0_i32_0 : i32, i32
  }
  func.func @transform_6(%arg0: i32) -> (i32, i32) {
    %c0_i32 = arith.constant 0 : i32
    %c0_i32_0 = arith.constant 0 : i32
    %c0_i32_1 = arith.constant 0 : i32
    return %c0_i32, %c0_i32_0 : i32, i32
  }
  func.func @transform_7(%arg0: i32) -> (i32, i32) {
    %c0_i32 = arith.constant 0 : i32
    %c0_i32_0 = arith.constant 0 : i32
    return %c0_i32, %arg0 : i32, i32
  }
}

</mosaic_0001>

<bundles_post_ra>
// kernel: tpu_custom_call.1
= control target key start
LH: loop header
LB: loop body
LE: loop exit
PB: predicated region body
PF: predicated region fallthrough
CT: control target
= control target key end

     0   :  { %s686_s0 = inlined_call_operand.vmem [shape: f32[128,16], index: 0, kind: input, shape index: {}]   ;;  %s687_s1 = inlined_call_operand.vmem [shape: f32[64,16], index: 1, kind: input, shape index: {}]   ;;  %s688_s2 = inlined_call_operand.vmem [shape: f32[64,1], index: 2, kind: input, shape index: {}]   ;;  %s689_s3 = inlined_call_operand.vmem [shape: f32[32,64], index: 3, kind: input, shape index: {}]   ;;  %s690_s4 = inlined_call_operand.vmem [shape: f32[32,1], index: 4, kind: input, shape index: {}]   ;;  %s691_s5 = inlined_call_operand.vmem [shape: f32[32,1], index: 5, kind: input, shape index: {}]   ;;  %s692_s6 = inlined_call_operand.<no memory space> [shape: f32[1,1], index: 6, kind: input, shape index: {}]   ;;  %s693_s7 = inlined_call_operand.hbm [shape: f32[1,128], index: 7, kind: output, shape index: {}]  }
   0x1   :  { %v12_v0 = vstv %s692_s6 }
   0x2   :  { %13 = vst [vmem:[#allocation2] sm:$0x1] %v12_v0 }
   0x3   :  { %v44_v1 = vld [vmem:[%s686_s0 + $0x78] sm:$0xff]  ;;  %vm101_vm0 = vcmask 130048   ;;  %v43_v2 = vld [vmem:[%s686_s0 + $0x70] sm:$0xff] }
   0x4   :  { %388 = vmatpush.xpose.msk.msra.mxu3 %vm101_vm0, %v44_v1  ;;  %387 = vmatpush.xpose.msk.msra.mxu2 %vm101_vm0, %v44_v1 }
   0x5   :  { %359 = vmatpush.xpose.msk.msra.mxu0 %vm101_vm0, %v44_v1 }
   0x6   :  { %14 = vsyncpa [#allocation4], 0  ;;  %v42_v3 = vld [vmem:[%s686_s0 + $0x68] sm:$0xff]  ;;  %v41_v4 = vld [vmem:[%s686_s0 + $0x60] sm:$0xff]  ;;  %v450_v13 = vmov 0   ;;  %vm251_vm1 = vcmask 523264  }
   0x7   :  { %v40_v5 = vld [vmem:[%s686_s0 + $0x58] sm:$0xff]  ;;  %v39_v6 = vld [vmem:[%s686_s0 + $0x50] sm:$0xff]  ;;  %v38_v7 = vld [vmem:[%s686_s0 + $0x48] sm:$0xff]  ;;  %421 = vset.pattern.permute.xlu0 %v450_v13  ;;  %422 = vset.pattern.permute.xlu1 %v450_v13  ;;  %s350_s15 = sshll.u32 %s693_s7, 4  ;;  %s351_s15 = int_to_ptr.hbm [resolvable:$true] %s350_s15 }
   0x8   :  { %390 = vmatpush.xpose.msk.msra.mxu3 %vm101_vm0, %v43_v2  ;;  %389 = vmatpush.xpose.msk.msra.mxu2 %vm101_vm0, %v43_v2  ;;  %v37_v8 = vld [vmem:[%s686_s0 + $0x40] sm:$0xff]  ;;  %v36_v9 = vld [vmem:[%s686_s0 + $0x38] sm:$0xff]  ;;  %v58_v11 = vld [vmem:[%s688_s2 + $0x28] sm:$0xff] }
   0x9   :  { %360 = vmatpush.xpose.msk.msra.mxu0 %vm101_vm0, %v43_v2  ;;  %v60_v10 = vld [vmem:[%s688_s2 + $0x38] sm:$0xff]  ;;  %v35_v12 = vld [vmem:[%s686_s0 + $0x30] sm:$0xff]  ;;  %88 = vperm.xlu1 %422, %v58_v11   ;;  %v34_v14 = vld [vmem:[%s686_s0 + $0x28] sm:$0xff] }
   0xa   :  { %98 = vperm.xlu0 %421, %v60_v10   ;;  %423 = vset.pattern.permute.xlu2 %v450_v13  ;;  %v59_v15 = vld [vmem:[%s688_s2 + $0x30] sm:$0xff]  ;;  %v57_v16 = vld [vmem:[%s688_s2 + $0x20] sm:$0xff]  ;;  %v32_v18 = vld [vmem:[%s686_s0 + $0x18] sm:$0xff] }
   0xb   :  { %v33_v17 = vld [vmem:[%s686_s0 + $0x20] sm:$0xff]  ;;  %v54_v19 = vld [vmem:[%s688_s2 + $0x8] sm:$0xff]  ;;  %v31_v21 = vld [vmem:[%s686_s0 + $0x10] sm:$0xff] }
   0xc   :  { %392 = vmatpush.xpose.msk.msra.mxu3 %vm101_vm0, %v42_v3  ;;  %391 = vmatpush.xpose.msk.msra.mxu2 %vm101_vm0, %v42_v3  ;;  %v53_v20 = vld [vmem:[%s688_s2] sm:$0xff]  ;;  %v30_v22 = vld [vmem:[%s686_s0 + $0x8] sm:$0xff]  ;;  %v229_v24 = vld [vmem:[%s690_s4 + $0x10] sm:$0xff] }
   0xd   :  { %361 = vmatpush.xpose.msk.msra.mxu0 %vm101_vm0, %v42_v3  ;;  %v228_v23 = vld [vmem:[%s690_s4 + $0x8] sm:$0xff]  ;;  %v29_v25 = vld [vmem:[%s686_s0] sm:$0xff]  ;;  %v48_v26 = vld [vmem:[%s687_s1 + $0x18] sm:$0xff] }
   0xe   :  { %v46_v27 = vld [vmem:[%s687_s1 + $0x8] sm:$0xff]  ;;  %v297_v28 = vld [vmem:[%s691_s5] sm:$0xff]  ;;  %v56_v31 = vld [vmem:[%s688_s2 + $0x18] sm:$0xff] }
   0xf   :  { %v45_v29 = vld [vmem:[%s687_s1] sm:$0xff]  ;;  %v298_v30 = vld [vmem:[%s691_s5 + $0x8] sm:$0xff]  ;;  %78 = vperm.xlu2 %423, %v56_v31   ;;  %v47_v33 = vld [vmem:[%s687_s1 + $0x10] sm:$0xff] }
  0x10   :  { %394 = vmatpush.xpose.msk.msra.mxu3 %vm101_vm0, %v41_v4  ;;  %393 = vmatpush.xpose.msk.msra.mxu2 %vm101_vm0, %v41_v4  ;;  %v49_v32 = vld [vmem:[%s687_s1 + $0x20] sm:$0xff]  ;;  %v55_v34 = vld [vmem:[%s688_s2 + $0x10] sm:$0xff]  ;;  %v300_v35 = vld [vmem:[%s691_s5 + $0x18] sm:$0xff] }
  0x11   :  { %362 = vmatpush.xpose.msk.msra.mxu0 %vm101_vm0, %v41_v4  ;;  %83 = vperm.xlu1 %422, %v57_v16   ;;  %v334_v36 = vld [vmem:[#allocation2] sm:$0x1]  ;;  %v50_v37 = vld [vmem:[%s687_s1 + $0x28] sm:$0xff]  ;;  %v51_v39 = vld [vmem:[%s687_s1 + $0x30] sm:$0xff] }
  0x12   :  { %93 = vperm.xlu0 %421, %v59_v15   ;;  %v227_v38 = vld [vmem:[%s690_s4] sm:$0xff]  ;;  %v230_v40 = vld [vmem:[%s690_s4 + $0x18] sm:$0xff]  ;;  %v299_v42 = vld [vmem:[%s691_s5 + $0x10] sm:$0xff] }
  0x13   :  { %v52_v41 = vld [vmem:[%s687_s1 + $0x38] sm:$0xff]  ;;  %v223_v11 = vld [vmem:[%s689_s3] sm:$0xff]  ;;  %v225_v13 = vld [vmem:[%s689_s3 + $0x10] sm:$0xff] }
  0x14   :  { %396 = vmatpush.xpose.msk.msra.mxu3 %vm101_vm0, %v40_v5  ;;  %395 = vmatpush.xpose.msk.msra.mxu2 %vm101_vm0, %v40_v5 }
  0x15   :  { %363 = vmatpush.xpose.msk.msra.mxu0 %vm101_vm0, %v40_v5 }
  0x17   :  { %73 = vperm.xlu2 %423, %v55_v34  }
  0x18   :  { %398 = vmatpush.xpose.msk.msra.mxu3 %vm101_vm0, %v39_v6  ;;  %397 = vmatpush.xpose.msk.msra.mxu2 %vm101_vm0, %v39_v6 }
  0x19   :  { %364 = vmatpush.xpose.msk.msra.mxu0 %vm101_vm0, %v39_v6  ;;  %63 = vperm.xlu1 %422, %v53_v20  }
  0x1a   :  { %68 = vperm.xlu0 %421, %v54_v19  }
  0x1c   :  { %400 = vmatpush.xpose.msk.msra.mxu3 %vm101_vm0, %v38_v7  ;;  %399 = vmatpush.xpose.msk.msra.mxu2 %vm101_vm0, %v38_v7 }
  0x1d   :  { %365 = vmatpush.xpose.msk.msra.mxu0 %vm101_vm0, %v38_v7 }
  0x1f   :  { %233 = vperm.xlu2 %423, %v227_v38  }
  0x20   :  { %402 = vmatpush.xpose.msk.msra.mxu3 %vm101_vm0, %v37_v8  ;;  %401 = vmatpush.xpose.msk.msra.mxu2 %vm101_vm0, %v37_v8 }
  0x21   :  { %366 = vmatpush.xpose.msk.msra.mxu0 %vm101_vm0, %v37_v8  ;;  %243 = vperm.xlu1 %422, %v229_v24  }
  0x22   :  { %238 = vperm.xlu0 %421, %v228_v23  }
  0x24   :  { %404 = vmatpush.xpose.msk.msra.mxu3 %vm101_vm0, %v36_v9  ;;  %403 = vmatpush.xpose.msk.msra.mxu2 %vm101_vm0, %v36_v9 }
  0x25   :  { %367 = vmatpush.xpose.msk.msra.mxu0 %vm101_vm0, %v36_v9 }
  0x27   :  { %248 = vperm.xlu2 %423, %v230_v40  }
  0x28   :  { %406 = vmatpush.xpose.msk.msra.mxu3 %vm101_vm0, %v35_v12  ;;  %405 = vmatpush.xpose.msk.msra.mxu2 %vm101_vm0, %v35_v12 }
  0x29   :  { %368 = vmatpush.xpose.msk.msra.mxu0 %vm101_vm0, %v35_v12  ;;  %308 = vperm.xlu1 %422, %v298_v30   ;;  %v224_v12 = vld [vmem:[%s689_s3 + $0x8] sm:$0xff] }
  0x2a   :  { %303 = vperm.xlu0 %421, %v297_v28  }
  0x2c   :  { %408 = vmatpush.xpose.msk.msra.mxu3 %vm101_vm0, %v34_v14  ;;  %407 = vmatpush.xpose.msk.msra.mxu2 %vm101_vm0, %v34_v14 }
  0x2d   :  { %369 = vmatpush.xpose.msk.msra.mxu0 %vm101_vm0, %v34_v14  ;;  %v226_v14 = vld [vmem:[%s689_s3 + $0x18] sm:$0xff]  ;;  %s451_s3 = smov [#allocation3]  }
  0x2e   :  { %s348_s12 = sshll.u32 %s451_s3, 4  ;;  %s349_s12 = int_to_ptr.vmem [resolvable:$true] %s348_s12 }
  0x2f   :  { %313 = vperm.xlu2 %423, %v299_v42  }
  0x30   :  { %410 = vmatpush.xpose.msk.msra.mxu3 %vm101_vm0, %v33_v17  ;;  %409 = vmatpush.xpose.msk.msra.mxu2 %vm101_vm0, %v33_v17 }
  0x31   :  { %370 = vmatpush.xpose.msk.msra.mxu0 %vm101_vm0, %v33_v17  ;;  %337 = vperm.xlu1 %422, %v334_v36  }
  0x32   :  { %318 = vperm.xlu0 %421, %v300_v35  }
  0x34   :  { %412 = vmatpush.xpose.msk.msra.mxu3 %vm101_vm0, %v32_v18  ;;  %411 = vmatpush.xpose.msk.msra.mxu2 %vm101_vm0, %v32_v18 }
  0x35   :  { %371 = vmatpush.xpose.msk.msra.mxu0 %vm101_vm0, %v32_v18 }
  0x38   :  { %414 = vmatpush.xpose.msk.msra.mxu3 %vm101_vm0, %v31_v21  ;;  %413 = vmatpush.xpose.msk.msra.mxu2 %vm101_vm0, %v31_v21 }
  0x39   :  { %372 = vmatpush.xpose.msk.msra.mxu0 %vm101_vm0, %v31_v21 }
  0x3c   :  { %416 = vmatpush.xpose.msk.msra.mxu3 %vm101_vm0, %v30_v22  ;;  %415 = vmatpush.xpose.msk.msra.mxu2 %vm101_vm0, %v30_v22 }
  0x3d   :  { %373 = vmatpush.xpose.msk.msra.mxu0 %vm101_vm0, %v30_v22 }
  0x40   :  { %418 = vmatpush.xpose.msk.msra.mxu3 %vm101_vm0, %v29_v25  ;;  %417 = vmatpush.xpose.msk.msra.mxu2 %vm101_vm0, %v29_v25 }
  0x41   :  { %374 = vmatpush.xpose.msk.msra.mxu0 %vm101_vm0, %v29_v25 }
  0x43   :  { %378 = vmatmul.msk.f32.vlgmr.msra.gmra.mxu3 %vm101_vm0, %v48_v26  ;;  %376 = vmatmul.msk.f32.vlgmr.msra.gmra.mxu2 %vm101_vm0, %v46_v27 }
  0x44   :  { %375 = vmatmul.msk.f32.vlgmr.msra.gmra.mxu0 %vm101_vm0, %v45_v29 }
  0x4b   :  { %379 = vmatmul.msk.f32.gmra.mxu3 %vm101_vm0, %v49_v32  ;;  %377 = vmatmul.msk.f32.gmra.mxu2 %vm101_vm0, %v47_v33 }
  0x53   :  { %380 = vmatmul.msk.f32.gmra.mxu3 %vm101_vm0, %v50_v37 }
  0x5b   :  { %381 = vmatmul.msk.f32.gmra.mxu3 %vm101_vm0, %v51_v39 }
  0x63   :  { %382 = vmatmul.msk.f32.gmra.mxu3 %vm101_vm0, %v52_v41 }
  0x69   :  { %v79_v50 = vpop.permute.xlu2 %78 }
  0x71   :  { %v74_v63 = vpop.permute.xlu2 %73 }
  0x79   :  { %v234_v16 = vpop.permute.xlu2 %233 }
  0x7b   :  { %v89_v47 = vpop.permute.xlu1 %88 }
  0x7c   :  { %v99_v46 = vpop.permute.xlu0 %98 }
  0x81   :  { %v249_v20 = vpop.permute.xlu2 %248 }
  0x83   :  { %v84_v55 = vpop.permute.xlu1 %83 }
  0x84   :  { %v94_v51 = vpop.permute.xlu0 %93 }
  0x89   :  { %v314_v31 = vpop.permute.xlu2 %313 }
  0x8b   :  { %v64_v6 = vpop.permute.xlu1 %63 }
  0x8c   :  { %v69_v2 = vpop.permute.xlu0 %68 }
  0x93   :  { %v244_v19 = vpop.permute.xlu1 %243 }
  0x94   :  { %v239_v17 = vpop.permute.xlu0 %238 }
  0x9b   :  { %v309_v29 = vpop.permute.xlu1 %308 }
  0x9c   :  { %v304_v25 = vpop.permute.xlu0 %303 }
  0xa4   :  { %v319_v38 = vpop.permute.xlu0 %318 }
  0xc1   :  { %v191_v3 = vpop.f32.mrf.mxu0 }
  0xc2   :  { %v192_v7 = vadd.f32 %v191_v3, %v64_v6 }
  0xc4   :  { %v215_v10 = vmax.f32 %v192_v7, 0.0 }
  0xc6   :  { %v200_v43 = vpop.f32.mrf.mxu3  ;;  %v194_v49 = vpop.f32.mrf.mxu2 }
  0xc7   :  { %v201_v61 = vadd.f32 %v200_v43, %v79_v50  ;;  %v195_v5 = vadd.f32 %v194_v49, %v69_v2 }
  0xc9   :  { %v218_v4 = vmax.f32 %v201_v61, 0.0  ;;  %v216_v9 = vmax.f32 %v195_v5, 0.0 }
  0xce   :  { %v203_v44 = vpop.f32.mrf.mxu3  ;;  %v197_v60 = vpop.f32.mrf.mxu2 }
  0xcf   :  { %v204_v58 = vadd.f32 %v203_v44, %v84_v55  ;;  %v198_v1 = vadd.f32 %v197_v60, %v74_v63 }
  0xd1   :  { %v219_v0 = vmax.f32 %v204_v58, 0.0  ;;  %v217_v8 = vmax.f32 %v198_v1, 0.0 }
  0xd6   :  { %v206_v45 = vpop.f32.mrf.mxu3 }
  0xd7   :  { %v207_v56 = vadd.f32 %v206_v45, %v89_v47 }
  0xd9   :  { %v220_v62 = vmax.f32 %v207_v56, 0.0 }
  0xde   :  { %v209_v48 = vpop.f32.mrf.mxu3 }
  0xdf   :  { %v210_v53 = vadd.f32 %v209_v48, %v94_v51 }
  0xe1   :  { %v221_v59 = vmax.f32 %v210_v53, 0.0 }
  0xe6   :  { %v212_v52 = vpop.f32.mrf.mxu3 }
  0xe7   :  { %v213_v54 = vadd.f32 %v212_v52, %v99_v46  ;;  %v338_v46 = vpop.permute.xlu1 %337 }
  0xe8   :  { %v340_v48 = vperm.slane %v338_v46, 0 }
  0xe9   :  { %v222_v57 = vmax.f32 %v213_v54, 0.0 }
  0xeb   :  { %272 = vmatpush.msra.mxu1 %v222_v57 }
  0xed   :  { %273 = vmatpush.msra.mxu1 %v221_v59 }
  0xef   :  { %274 = vmatpush.msra.mxu1 %v220_v62 }
  0xf1   :  { %275 = vmatpush.msra.mxu1 %v219_v0 }
  0xf3   :  { %276 = vmatpush.msra.mxu1 %v218_v4 }
  0xf5   :  { %277 = vmatpush.msra.mxu1 %v217_v8 }
  0xf7   :  { %278 = vmatpush.msra.mxu1 %v216_v9 }
  0xf9   :  { %279 = vmatpush.msra.mxu1 %v215_v10 }
  0xfa   :  { %383 = vmatmul.msk.f32.vlgmr.msra.gmra.mxu1 %vm251_vm1, %v223_v11 }
 0x102   :  { %384 = vmatmul.msk.f32.gmra.mxu1 %vm251_vm1, %v224_v12 }
 0x10a   :  { %385 = vmatmul.msk.f32.gmra.mxu1 %vm251_vm1, %v225_v13 }
 0x112   :  { %386 = vmatmul.msk.f32.gmra.mxu1 %vm251_vm1, %v226_v14 }
 0x177   :  { %v281_v15 = vpop.f32.mrf.mxu1 }
 0x178   :  { %v282_v23 = vadd.f32 %v281_v15, %v234_v16 }
 0x17a   :  { %v293_v27 = vmax.f32 %v282_v23, 0.0 }
 0x17c   :  { %v321_v33 = vmul.f32 %v304_v25, %v293_v27 }
 0x17f   :  { %v284_v18 = vpop.f32.mrf.mxu1 }
 0x180   :  { %v285_v21 = vadd.f32 %v284_v18, %v239_v17 }
 0x182   :  { %v294_v26 = vmax.f32 %v285_v21, 0.0 }
 0x184   :  { %v322_v30 = vmul.f32 %v309_v29, %v294_v26 }
 0x186   :  { %v325_v36 = vadd.f32 %v322_v30, %v321_v33 }
 0x187   :  { %v287_v22 = vpop.f32.mrf.mxu1 }
 0x188   :  { %v288_v24 = vadd.f32 %v287_v22, %v244_v19 }
 0x18a   :  { %v295_v28 = vmax.f32 %v288_v24, 0.0 }
 0x18c   :  { %v323_v34 = vmul.f32 %v314_v31, %v295_v28 }
 0x18e   :  { %v326_v39 = vadd.f32 %v325_v36, %v323_v34 }
 0x18f   :  { %v290_v32 = vpop.f32.mrf.mxu1 }
 0x190   :  { %v291_v35 = vadd.f32 %v290_v32, %v249_v20 }
 0x192   :  { %v296_v37 = vmax.f32 %v291_v35, 0.0 }
 0x194   :  { %v324_v40 = vmul.f32 %v319_v38, %v296_v37 }
 0x196   :  { %v327_v41 = vadd.f32 %v326_v39, %v324_v40 }
 0x198   :  { %v328_v42 = vrot.slane %v327_v41, 4 }
 0x19a   :  { %v329_v43 = vadd.f32 %v328_v42, %v327_v41 }
 0x19c   :  { %v330_v44 = vrot.slane %v329_v43, 2 }
 0x19e   :  { %v331_v45 = vadd.f32 %v330_v44, %v329_v43 }
 0x1a0   :  { %v332_v47 = vrot.slane %v331_v45, 1 }
 0x1a2   :  { %v333_v49 = vadd.f32 %v332_v47, %v331_v45 }
 0x1a4   :  { %v341_v50 = vadd.f32 %v340_v48, %v333_v49 }
 0x1a6   :  { %342 = vst [vmem:[#allocation3] sm:$0x1] %v341_v50 }
 0x1a7   :  { %353 = dma.vmem_to_hbm [thread:$0]  %s349_s12, 16, %s351_s15, [#allocation4]  }
 0x1a8   :  { %448 = dma.done.wait [#allocation4], 16  }
 0x1a9   :  { %449 = vsyncadd [#allocation4], 4294967280 }
 0x1aa   :  { %358 = vsyncpa [#allocation4], 1 }

</bundles_post_ra>
